<compile_context>
chip_gen: v6e
topology: v6e:2x2x1
jax: 0.10.0
libtpu: 0.0.40
codegen_flags: <defaults>
</compile_context>

<pallas_src>
import functools

import jax
import jax.numpy as jnp
from jax.experimental import pallas as pl
from jax.experimental.pallas import tpu as pltpu


def _focal_loss_kernel(x_ref, t_ref, o_ref, *, gamma, eps, n_true):
    i = pl.program_id(0)
    x = x_ref[...]                                   # (tn, C), input dtype (f32 or bf16)
    t = t_ref[...]                                   # (tn, 1), int32 labels
    tn, c = x.shape

    class_ids = jax.lax.broadcasted_iota(jnp.int32, (tn, c), 1)

    # Row max and target logit in the *input* dtype (compare/select/max are
    # exact), halving full-width VPU/XLU work for bf16 inputs.
    neg_inf = jnp.asarray(-jnp.inf, dtype=x.dtype)
    m = jnp.max(x, axis=-1, keepdims=True)                                    # (tn, 1)
    x_t = jnp.max(jnp.where(class_ids == t, x, neg_inf),
                  axis=-1, keepdims=True)                                     # (tn, 1)

    # Single full-width EUP pass; everything else on the (tn, 1) slab.
    m_f = m.astype(jnp.float32)
    e = jnp.exp(x.astype(jnp.float32) - m_f)                                  # (tn, C)
    s = jnp.sum(e, axis=-1, keepdims=True)                                    # (tn, 1)
    e_t = jnp.exp(x_t.astype(jnp.float32) - m_f)                              # (tn, 1)

    p_t = jnp.clip(e_t / s, eps, 1.0 - eps)
    q = 1.0 - p_t
    if gamma == 2.0:
        w = q * q                     # VPU multiply; no pow (= exp . log) pass
    elif gamma == 1.0:
        w = q
    elif gamma == 0.0:
        w = jnp.ones_like(q)
    else:
        w = q ** gamma
    loss = -jnp.log(p_t) * w                                                  # (tn, 1)

    # Defensive mask for the partial last row tile (garbage rows -> 0.0 before
    # any store; out-of-range rows are additionally clipped on writeback).
    row_ids = i * tn + jax.lax.broadcasted_iota(jnp.int32, (tn, 1), 0)
    o_ref[...] = jnp.where(row_ids < n_true, loss, 0.0)


def focal_loss(logits, target, gamma=2.0, eps=1e-7, block_bytes=2 << 20):
    """logits: (N, C) float (f32 or bf16); target: (N,) int. Returns scalar f32."""
    n, c = logits.shape
    itemsize = jnp.dtype(logits.dtype).itemsize

    # Row tile sized so each logits block is ~block_bytes; multiple of 8 and
    # never larger than N rounded down to 8 (so no block exceeds the array).
    if n <= 8:
        tile_n = n                    # block dim == full array dim is always legal
    else:
        cap = min(1024, (n // 8) * 8)
        by_bytes = (block_bytes // max(1, c * itemsize)) // 8 * 8
        tile_n = max(8, min(cap, by_bytes))

    grid = (pl.cdiv(n, tile_n),)
    t2d = target.reshape(n, 1).astype(jnp.int32)

    # Explicit VMEM budget: double-buffered input block + f32 temporaries,
    # with headroom; capped at 48 MiB to stay safe on v7x (64 MiB per TC).
    est = 2 * tile_n * c * itemsize + 4 * tile_n * c * 4 + (1 << 20)
    vmem_limit = int(min(max(est, 16 << 20), 48 << 20))

    per_sample = pl.pallas_call(
        functools.partial(_focal_loss_kernel, gamma=gamma, eps=eps, n_true=n),
        out_shape=jax.ShapeDtypeStruct((n, 1), jnp.float32),
        grid=grid,
        in_specs=[
            pl.BlockSpec((tile_n, c), lambda i: (i, 0)),   # full class axis, no pad
            pl.BlockSpec((tile_n, 1), lambda i: (i, 0)),
        ],
        out_specs=pl.BlockSpec((tile_n, 1), lambda i: (i, 0)),
        compiler_params=pltpu.CompilerParams(
            dimension_semantics=("parallel",),             # no cross-step state
            vmem_limit_bytes=vmem_limit,
        ),
    )(logits, t2d)

    # Tiny final reduction (N f32 values) in the wrapper keeps the grid parallel.
    return jnp.mean(per_sample)


def _reference(logits, target, gamma=2.0, eps=1e-7):
    p = jax.nn.softmax(logits.astype(jnp.float32), axis=-1)
    p = jnp.clip(p, eps, 1.0 - eps)
    y = jax.nn.one_hot(target, logits.shape[-1], dtype=jnp.float32)
    loss = (-y * jnp.log(p)) * (1.0 - p) ** gamma
    return jnp.mean(jnp.sum(loss, axis=1))


if __name__ == "__main__":
    key = jax.random.PRNGKey(0)
    k1, k2, k3, k4 = jax.random.split(key, 4)

    # Test 1: small batch, single tile, f32 logits, C not a multiple of 128.
    N, C = 8, 32
    logits = jax.random.normal(k1, (N, C), dtype=jnp.float32)
    target = jax.random.randint(k2, (N,), 0, C, dtype=jnp.int32)
    out = jax.block_until_ready(focal_loss(logits, target))
    ref = _reference(logits, target)
    assert jnp.allclose(out, ref, rtol=3e-5, atol=1e-6), (out, ref)

    # Test 2: multi-tile grid with a partial last row tile (N=20 -> tiles of 16)
    # and bf16 logits passed straight through (no wrapper upcast, no pad).
    N2, C2 = 20, 37
    logits2 = jax.random.normal(k3, (N2, C2), dtype=jnp.float32).astype(jnp.bfloat16)
    target2 = jax.random.randint(k4, (N2,), 0, C2, dtype=jnp.int32)
    out2 = jax.block_until_ready(focal_loss(logits2, target2))
    ref2 = _reference(logits2, target2)
    assert jnp.allclose(out2, ref2, rtol=3e-5, atol=1e-6), (out2, ref2)

    print("KERNEL_OK")
</pallas_src>

<mosaic_0001>
module attributes {stable_mosaic.version = 11 : i64} {
  func.func @_focal_loss_kernel(%arg0: i32, %arg1: memref<8x32xf32, #tpu.memory_space<vmem>>, %arg2: memref<8x1xi32, #tpu.memory_space<vmem>>, %arg3: memref<8x1xf32, #tpu.memory_space<vmem>>) attributes {dimension_semantics = [#tpu.dimension_semantics<parallel>], iteration_bounds = array<i64: 1>, scalar_prefetch = 0 : i64, scratch_operands = 0 : i64, tpu.core_type = #tpu.core_type<tc>, window_params = [{transform_indices = @transform_0, window_bounds = array<i64: 8, 32>}, {transform_indices = @transform_1, window_bounds = array<i64: 8, 1>}, {transform_indices = @transform_2, window_bounds = array<i64: 8, 1>}]} {
    %c0 = arith.constant 0 : index
    %c0_0 = arith.constant 0 : index
    %0 = vector.load %arg1[%c0, %c0_0] : memref<8x32xf32, #tpu.memory_space<vmem>>, vector<8x32xf32>
    %c0_1 = arith.constant 0 : index
    %c0_2 = arith.constant 0 : index
    %1 = vector.load %arg2[%c0_1, %c0_2] : memref<8x1xi32, #tpu.memory_space<vmem>>, vector<8x1xi32>
    %2 = tpu.iota {dimensions = array<i32: 1>} : vector<8x32xi32>
    %cst = arith.constant dense<0xFF800000> : vector<8xf32>
    %3 = vector.multi_reduction <maximumf>, %0, %cst [1] : vector<8x32xf32> to vector<8xf32>
    %4 = vector.shape_cast %3 : vector<8xf32> to vector<8x1xf32>
    %5 = vector.broadcast %1 : vector<8x1xi32> to vector<8x32xi32>
    %6 = arith.cmpi eq, %2, %5 : vector<8x32xi32>
    %cst_3 = arith.constant 0xFF800000 : f32
    %7 = vector.broadcast %cst_3 : f32 to vector<8x32xf32>
    %8 = arith.select %6, %0, %7 : vector<8x32xi1>, vector<8x32xf32>
    %cst_4 = arith.constant dense<0xFF800000> : vector<8xf32>
    %9 = vector.multi_reduction <maximumf>, %8, %cst_4 [1] : vector<8x32xf32> to vector<8xf32>
    %10 = vector.shape_cast %9 : vector<8xf32> to vector<8x1xf32>
    %11 = vector.broadcast %4 : vector<8x1xf32> to vector<8x32xf32>
    %12 = arith.subf %0, %11 : vector<8x32xf32>
    %13 = math.exp %12 : vector<8x32xf32>
    %cst_5 = arith.constant dense<0.000000e+00> : vector<8xf32>
    %14 = vector.multi_reduction <add>, %13, %cst_5 [1] : vector<8x32xf32> to vector<8xf32>
    %15 = vector.shape_cast %14 : vector<8xf32> to vector<8x1xf32>
    %16 = arith.subf %10, %4 : vector<8x1xf32>
    %17 = math.exp %16 : vector<8x1xf32>
    %18 = arith.divf %17, %15 : vector<8x1xf32>
    %cst_6 = arith.constant 1.000000e-07 : f32
    %cst_7 = arith.constant 0.99999988 : f32
    %19 = vector.broadcast %cst_6 : f32 to vector<8x1xf32>
    %20 = arith.maximumf %19, %18 : vector<8x1xf32>
    %21 = vector.broadcast %cst_7 : f32 to vector<8x1xf32>
    %22 = arith.minimumf %21, %20 : vector<8x1xf32>
    %cst_8 = arith.constant 1.000000e+00 : f32
    %23 = vector.broadcast %cst_8 : f32 to vector<8x1xf32>
    %24 = arith.subf %23, %22 : vector<8x1xf32>
    %25 = arith.mulf %24, %24 : vector<8x1xf32>
    %26 = math.log %22 : vector<8x1xf32>
    %cst_9 = arith.constant 0.000000e+00 : f32
    %27 = vector.broadcast %cst_9 : f32 to vector<8x1xf32>
    %28 = arith.subf %27, %26 : vector<8x1xf32>
    %29 = arith.mulf %28, %25 : vector<8x1xf32>
    %c8_i32 = arith.constant 8 : i32
    %30 = arith.muli %arg0, %c8_i32 : i32
    %31 = tpu.iota {dimensions = array<i32: 0>} : vector<8x1xi32>
    %32 = vector.broadcast %30 : i32 to vector<8x1xi32>
    %33 = arith.addi %32, %31 : vector<8x1xi32>
    %c8_i32_10 = arith.constant 8 : i32
    %34 = vector.broadcast %c8_i32_10 : i32 to vector<8x1xi32>
    %35 = arith.cmpi slt, %33, %34 : vector<8x1xi32>
    %cst_11 = arith.constant 0.000000e+00 : f32
    %36 = vector.broadcast %cst_11 : f32 to vector<8x1xf32>
    %37 = arith.select %35, %29, %36 : vector<8x1xi1>, vector<8x1xf32>
    %c0_12 = arith.constant 0 : index
    %c0_13 = arith.constant 0 : index
    %38 = vector.load %arg3[%c0_12, %c0_13] : memref<8x1xf32, #tpu.memory_space<vmem>>, vector<8x1xf32>
    tpu.vector_store %arg3[%c0_12, %c0_13], %37 {strides = array<i32>} : memref<8x1xf32, #tpu.memory_space<vmem>>, vector<8x1xf32>,
    return
  }
  func.func @transform_0(%arg0: i32) -> (i32, i32) {
    %c0_i32 = arith.constant 0 : i32
    %c0_i32_0 = arith.constant 0 : i32
    return %arg0, %c0_i32 : i32, i32
  }
  func.func @transform_1(%arg0: i32) -> (i32, i32) {
    %c0_i32 = arith.constant 0 : i32
    %c0_i32_0 = arith.constant 0 : i32
    return %arg0, %c0_i32 : i32, i32
  }
  func.func @transform_2(%arg0: i32) -> (i32, i32) {
    %c0_i32 = arith.constant 0 : i32
    %c0_i32_0 = arith.constant 0 : i32
    return %arg0, %c0_i32 : i32, i32
  }
}

</mosaic_0001>

<bundles_post_ra>
// kernel: tpu_custom_call.1
= control target key start
LH: loop header
LB: loop body
LE: loop exit
PB: predicated region body
PF: predicated region fallthrough
CT: control target
= control target key end

     0   :  { %vm15_vm0 = vcmask 261120   ;;  %v69_v1 = vmov 0   ;;  %v13_v6 = vlaneseq  ;;  %vm53_vm2 = vcmask 7168   ;;  %s97_s0 = inlined_call_operand.vmem [shape: f32[8,32], index: 0, kind: input, shape index: {}]   ;;  %s98_s1 = inlined_call_operand.vmem [shape: s32[8,1], index: 1, kind: input, shape index: {}]   ;;  %s99_s2 = inlined_call_operand.vmem [shape: f32[8,1], index: 2, kind: output, shape index: {}]  }
   0x1   :  { %v11_v0 = vld [vmem:[%s97_s0] sm:$0xff]  ;;  %60 = vset.pattern.permute.xlu0 %v69_v1 }
   0x2   :  { %v16_v2 = vsel %vm15_vm0, %v11_v0, -inf  ;;  %v12_v3 = vld [vmem:[%s98_s1] sm:$0xff]  ;;  %v14_v8 = vand.u32 127, %v13_v6 }
   0x3   :  { %17 = vmax.xlane.f32.xlu0 %v16_v2 }
  0x19   :  { %20 = vperm.xlu0 %60, %v12_v3  }
  0x8c   :  { %v18_v4 = vpop.xlane.xlu0 %17 }
  0x8d   :  { %v27_v5 = vsub.f32 %v11_v0, %v18_v4 }
  0x8f   :  { %v28_v7 = vmul.f32 1.442695, %v27_v5 }
  0x91   :  { %61 = vpow2.f32 %v28_v7 }
  0x94   :  { %v21_v9 = vpop.permute.xlu0 %20 }
  0x95   :  { %vm22_vm1 = vcmp.eq.s32.totalorder %v14_v8, %v21_v9 }
  0x96   :  { %v23_v10 = vsel %vm22_vm1, %v11_v0, -inf }
  0x97   :  { %v24_v11 = vsel %vm15_vm0, %v23_v10, -inf }
  0x98   :  { %25 = vmax.xlane.f32.xlu1 %v24_v11 }
  0x9e   :  { %v62_v12 = vpop.eup %61 }
  0x9f   :  { %v30_v13 = vsel %vm15_vm0, %v62_v12, 0.0 }
  0xa0   :  { %31 = vadd.xlane.f32.xlu1 %v30_v13 }
 0x121   :  { %v26_v14 = vpop.xlane.xlu1 %25 }
 0x122   :  { %v33_v15 = vsub.f32 %v26_v14, %v18_v4 }
 0x124   :  { %v34_v16 = vmul.f32 1.442695, %v33_v15 }
 0x126   :  { %63 = vpow2.f32 %v34_v16 }
 0x129   :  { %v32_v17 = vpop.xlane.xlu1 %31 }
 0x12a   :  { %65 = vrcp.f32 %v32_v17 }
 0x133   :  { %v64_v18 = vpop.eup %63 }
 0x137   :  { %v66_v19 = vpop.eup %65 }
 0x138   :  { %v37_v20 = vmul.f32 %v66_v19, %v64_v18 }
 0x13a   :  { %v38_v21 = vmax.f32 %v37_v20, 1e-07 }
 0x13c   :  { %v39_v22 = vmin.f32 %v38_v21, 0.9999999 }
 0x13e   :  { %67 = vlog2.f32 %v39_v22  ;;  %v40_v23 = vsub.f32 1.0, %v39_v22 }
 0x140   :  { %v41_v26 = vmul.f32 %v40_v23, %v40_v23 }
 0x14b   :  { %v68_v24 = vpop.eup %67 }
 0x14c   :  { %v43_v25 = vmul.f32 0.6931472, %v68_v24 }
 0x14e   :  { %v44_v27 = vsub.f32 0.0, %v43_v25 }
 0x150   :  { %v45_v28 = vmul.f32 %v44_v27, %v41_v26 }
 0x152   :  { %54 = vst.msk [vmem:[%s99_s2] sm:$0xff] %vm53_vm2, %v45_v28 }

</bundles_post_ra>
